<compile_context>
chip_gen: v7x
topology: tpu7x:2x2x1
jax: 0.10.0
libtpu: 0.0.40
codegen_flags: <defaults>
</compile_context>

<pallas_src>
import jax
import jax.numpy as jnp
import numpy as np
from jax.experimental import pallas as pl
from jax.experimental.pallas import tpu as pltpu

STATE_DIM = 3      # pendulum observation dim
ACTION_DIM = 1     # pendulum action dim
H1 = 400
H2 = 300
MAX_ACTION = 2.0   # pendulum max torque

# Lane-aligned padded sizes used inside the kernel.
H1_PAD = 512       # 400 -> 512  (4 x 128)
H2_PAD = 384       # 300 -> 384  (3 x 128) -- deliberately NOT 512
OUT_PAD = 128      # 1   -> 128  (lane-dense output store; lane 0 sliced outside)
B_PACKED = H1_PAD + H2_PAD + OUT_PAD   # 1024, packed-bias lane width


def _round_up(v, m):
    return ((v + m - 1) // m) * m


def _actor_kernel(x_ref, w1_ref, w2_ref, w3_ref, b_ref, o_ref):
    # Static lane-aligned slices of the packed bias (offsets 0 / 512 / 896).
    b1 = b_ref[:, 0:H1_PAD]                            # [1, H1_PAD] f32
    b2 = b_ref[:, H1_PAD:H1_PAD + H2_PAD]              # [1, H2_PAD] f32
    b3 = b_ref[:, H1_PAD + H2_PAD:B_PACKED]            # [1, OUT_PAD] f32

    # x arrives f32 (no wrapper cast); cast to bf16 for the MXU here.
    x = x_ref[...].astype(jnp.bfloat16)                # [bm, S]

    # Layer 1: bf16 MXU matmul, f32 accumulate, relu, re-quantize to bf16.
    h1 = jnp.dot(x, w1_ref[...], preferred_element_type=jnp.float32) + b1
    h1 = jnp.maximum(h1, 0.0).astype(jnp.bfloat16)     # [bm, H1_PAD]
    # Layer 2.
    h2 = jnp.dot(h1, w2_ref[...], preferred_element_type=jnp.float32) + b2
    h2 = jnp.maximum(h2, 0.0).astype(jnp.bfloat16)     # [bm, H2_PAD]
    # Layer 3: store raw pre-activation y (bf16).  max_action * tanh is fused
    # into the wrapper-side slice -> no wasted tanh on the 127 padded lanes,
    # and the [bm, 128] HBM writeback is half the size of f32.
    y = jnp.dot(h2, w3_ref[...], preferred_element_type=jnp.float32) + b3
    o_ref[...] = y.astype(o_ref.dtype)


def _pick_bm(batch):
    """Batch-tile selection (multiples of 16 for bf16 sublane packing)."""
    if batch <= 1024:
        return _round_up(batch, 16)                 # one grid step
    if batch <= 2048:
        return _round_up((batch + 1) // 2, 16)      # exactly 2 steps (v7x 2 TCs)
    return 1024                                     # large: amortize overhead


def actor_forward(x, padded_params, max_action):
    """x: [batch, STATE_DIM] float32. Returns [batch, ACTION_DIM] float32."""
    w1, w2, w3, bpacked = padded_params
    batch = x.shape[0]

    bm = _pick_bm(batch)
    b_pad = _round_up(batch, bm)

    xp = x
    if b_pad != batch:
        xp = jnp.pad(xp, ((0, b_pad - batch), (0, 0)))

    out = pl.pallas_call(
        _actor_kernel,
        out_shape=jax.ShapeDtypeStruct((b_pad, OUT_PAD), jnp.bfloat16),
        grid_spec=pltpu.PrefetchScalarGridSpec(
            num_scalar_prefetch=0,
            grid=(b_pad // bm,),
            in_specs=[
                pl.BlockSpec((bm, STATE_DIM), lambda i: (i, 0)),       # x (f32)
                pl.BlockSpec((STATE_DIM, H1_PAD), lambda i: (0, 0)),   # w1 (resident)
                pl.BlockSpec((H1_PAD, H2_PAD), lambda i: (0, 0)),      # w2 (resident)
                pl.BlockSpec((H2_PAD, OUT_PAD), lambda i: (0, 0)),     # w3 (resident)
                pl.BlockSpec((1, B_PACKED), lambda i: (0, 0)),         # packed biases
            ],
            out_specs=pl.BlockSpec((bm, OUT_PAD), lambda i: (i, 0)),
        ),
        compiler_params=pltpu.CompilerParams(
            dimension_semantics=("parallel",)),
    )(xp, w1, w2, w3, bpacked)

    # Fused epilogue: slice real rows / lane 0, then max_action * tanh in f32.
    y = out[:batch, :ACTION_DIM].astype(jnp.float32)
    return max_action * jnp.tanh(y)


def init_actor_params(key, state_dim, action_dim):
    """Master f32 params at true sizes, PyTorch nn.Linear-style uniform init.

    Weights are stored [in, out] (transpose of PyTorch's [out, in]); biases
    are [1, out] so they broadcast against [batch, out].
    """
    keys = jax.random.split(key, 6)

    def linear(kw, kb, fan_in, fan_out):
        bound = 1.0 / np.sqrt(fan_in)
        w = jax.random.uniform(kw, (fan_in, fan_out), jnp.float32, -bound, bound)
        b = jax.random.uniform(kb, (1, fan_out), jnp.float32, -bound, bound)
        return w, b

    w1, b1 = linear(keys[0], keys[1], state_dim, H1)
    w2, b2 = linear(keys[2], keys[3], H1, H2)
    w3, b3 = linear(keys[4], keys[5], H2, action_dim)
    return (w1, b1, w2, b2, w3, b3)


def pad_params_for_kernel(params):
    """Zero-pad weights to lane-aligned shapes (bf16); pack biases into one row.

    Zero padding is exact: padded H1 columns get relu(0+0)=0 and the matching
    padded W2 rows are zero, so padded lanes never contribute to real outputs;
    padded output lanes are sliced off in the wrapper.
    """
    w1, b1, w2, b2, w3, b3 = params

    def pad_w(a, rows, cols):
        out = jnp.zeros((rows, cols), jnp.bfloat16)
        return out.at[:a.shape[0], :a.shape[1]].set(a.astype(jnp.bfloat16))

    w1p = pad_w(w1, STATE_DIM, H1_PAD)
    w2p = pad_w(w2, H1_PAD, H2_PAD)
    w3p = pad_w(w3, H2_PAD, OUT_PAD)

    bpacked = jnp.zeros((1, B_PACKED), jnp.float32)
    bpacked = bpacked.at[0, :H1].set(b1.reshape(-1))
    bpacked = bpacked.at[0, H1_PAD:H1_PAD + H2].set(b2.reshape(-1))
    bpacked = bpacked.at[0, H1_PAD + H2_PAD:H1_PAD + H2_PAD + ACTION_DIM].set(
        b3.reshape(-1))
    return (w1p, w2p, w3p, bpacked)


def actor_reference_f32(x, params, max_action):
    """Full-precision reference (matches the PyTorch module semantics)."""
    w1, b1, w2, b2, w3, b3 = params
    h1 = jnp.maximum(x @ w1 + b1, 0.0)
    h2 = jnp.maximum(h1 @ w2 + b2, 0.0)
    return max_action * jnp.tanh(h2 @ w3 + b3)


def actor_reference_bf16(x, padded_params, max_action):
    """Pure-JAX mirror of the kernel's bf16/f32-accumulate arithmetic."""
    w1, w2, w3, bpacked = padded_params
    b1 = bpacked[:, :H1_PAD]
    b2 = bpacked[:, H1_PAD:H1_PAD + H2_PAD]
    b3 = bpacked[:, H1_PAD + H2_PAD:]
    xb = x.astype(jnp.bfloat16)
    h1 = jnp.maximum(
        jnp.dot(xb, w1, preferred_element_type=jnp.float32) + b1, 0.0
    ).astype(jnp.bfloat16)
    h2 = jnp.maximum(
        jnp.dot(h1, w2, preferred_element_type=jnp.float32) + b2, 0.0
    ).astype(jnp.bfloat16)
    y = (jnp.dot(h2, w3, preferred_element_type=jnp.float32) + b3
         ).astype(jnp.bfloat16)
    return max_action * jnp.tanh(y[:, :ACTION_DIM].astype(jnp.float32))


if __name__ == "__main__":
    key = jax.random.PRNGKey(0)
    k_params, k_x, k_x2 = jax.random.split(key, 3)

    master = init_actor_params(k_params, STATE_DIM, ACTION_DIM)
    padded = pad_params_for_kernel(master)

    # Small-batch path (single grid step).
    batch = 2
    x = jax.random.normal(k_x, (batch, STATE_DIM), jnp.float32)

    out = actor_forward(x, padded, MAX_ACTION)
    out = jax.block_until_ready(out)
    assert out.shape == (batch, ACTION_DIM)

    # Tight check vs. a pure-JAX mirror of the exact kernel arithmetic.
    ref_bf16 = actor_reference_bf16(x, padded, MAX_ACTION)
    np.testing.assert_allclose(np.asarray(out), np.asarray(ref_bf16),
                               rtol=2e-3, atol=2e-3)

    # Loose check vs. the full-precision (PyTorch-semantics) reference,
    # tolerance covers the bf16 weight/activation quantization only.
    ref_f32 = actor_reference_f32(x, master, MAX_ACTION)
    np.testing.assert_allclose(np.asarray(out), np.asarray(ref_f32),
                               rtol=3e-2, atol=3e-2)

    # Exercise the multi-step (tiled, padded-batch) path as well.
    batch2 = 1500
    x2 = jax.random.normal(k_x2, (batch2, STATE_DIM), jnp.float32)
    out2 = jax.block_until_ready(actor_forward(x2, padded, MAX_ACTION))
    assert out2.shape == (batch2, ACTION_DIM)
    ref2 = actor_reference_bf16(x2, padded, MAX_ACTION)
    np.testing.assert_allclose(np.asarray(out2), np.asarray(ref2),
                               rtol=2e-3, atol=2e-3)

    print("KERNEL_OK")
</pallas_src>

<mosaic_0001>
module attributes {stable_mosaic.version = 11 : i64} {
  func.func @_actor_kernel(%arg0: i32, %arg1: memref<16x3xf32, #tpu.memory_space<vmem>>, %arg2: memref<3x512xbf16, #tpu.memory_space<vmem>>, %arg3: memref<512x384xbf16, #tpu.memory_space<vmem>>, %arg4: memref<384x128xbf16, #tpu.memory_space<vmem>>, %arg5: memref<1x1024xf32, #tpu.memory_space<vmem>>, %arg6: memref<16x128xbf16, #tpu.memory_space<vmem>>) attributes {dimension_semantics = [#tpu.dimension_semantics<parallel>], iteration_bounds = array<i64: 1>, scalar_prefetch = 0 : i64, scratch_operands = 0 : i64, tpu.core_type = #tpu.core_type<tc>, window_params = [{transform_indices = @transform_0, window_bounds = array<i64: 16, 3>}, {pipeline_mode = #tpu.pipeline_mode<synchronous>, transform_indices = @transform_1, window_bounds = array<i64: 3, 512>}, {pipeline_mode = #tpu.pipeline_mode<synchronous>, transform_indices = @transform_2, window_bounds = array<i64: 512, 384>}, {pipeline_mode = #tpu.pipeline_mode<synchronous>, transform_indices = @transform_3, window_bounds = array<i64: 384, 128>}, {pipeline_mode = #tpu.pipeline_mode<synchronous>, transform_indices = @transform_4, window_bounds = array<i64: 1, 1024>}, {transform_indices = @transform_5, window_bounds = array<i64: 16, 128>}]} {
    %c0 = arith.constant 0 : index
    %c0_0 = arith.constant 0 : index
    %0 = vector.load %arg5[%c0, %c0_0] : memref<1x1024xf32, #tpu.memory_space<vmem>>, vector<1x512xf32>
    %c0_1 = arith.constant 0 : index
    %c512 = arith.constant 512 : index
    %1 = vector.load %arg5[%c0_1, %c512] : memref<1x1024xf32, #tpu.memory_space<vmem>>, vector<1x384xf32>
    %c0_2 = arith.constant 0 : index
    %c896 = arith.constant 896 : index
    %2 = vector.load %arg5[%c0_2, %c896] : memref<1x1024xf32, #tpu.memory_space<vmem>>, vector<1x128xf32>
    %c0_3 = arith.constant 0 : index
    %c0_4 = arith.constant 0 : index
    %3 = vector.load %arg1[%c0_3, %c0_4] : memref<16x3xf32, #tpu.memory_space<vmem>>, vector<16x3xf32>
    %4 = arith.truncf %3 : vector<16x3xf32> to vector<16x3xbf16>
    %c0_5 = arith.constant 0 : index
    %c0_6 = arith.constant 0 : index
    %5 = vector.load %arg2[%c0_5, %c0_6] : memref<3x512xbf16, #tpu.memory_space<vmem>>, vector<3x512xbf16>
    %cst = arith.constant dense<0.000000e+00> : vector<16x512xf32>
    %6 = tpu.matmul %4, %5, %cst {dimension_numbers = #tpu.dot_dimension_numbers<[1], [0], [0], [1], [0, 0, 1, 1], [], []>} : vector<16x3xbf16>, vector<3x512xbf16>, vector<16x512xf32> -> vector<16x512xf32>
    %7 = vector.broadcast %0 : vector<1x512xf32> to vector<16x512xf32>
    %8 = arith.addf %6, %7 : vector<16x512xf32>
    %cst_7 = arith.constant 0.000000e+00 : f32
    %9 = vector.broadcast %cst_7 : f32 to vector<16x512xf32>
    %10 = arith.maximumf %8, %9 : vector<16x512xf32>
    %11 = arith.truncf %10 : vector<16x512xf32> to vector<16x512xbf16>
    %c0_8 = arith.constant 0 : index
    %c0_9 = arith.constant 0 : index
    %12 = vector.load %arg3[%c0_8, %c0_9] : memref<512x384xbf16, #tpu.memory_space<vmem>>, vector<512x384xbf16>
    %cst_10 = arith.constant dense<0.000000e+00> : vector<16x384xf32>
    %13 = tpu.matmul %11, %12, %cst_10 {dimension_numbers = #tpu.dot_dimension_numbers<[1], [0], [0], [1], [0, 0, 1, 1], [], []>} : vector<16x512xbf16>, vector<512x384xbf16>, vector<16x384xf32> -> vector<16x384xf32>
    %14 = vector.broadcast %1 : vector<1x384xf32> to vector<16x384xf32>
    %15 = arith.addf %13, %14 : vector<16x384xf32>
    %cst_11 = arith.constant 0.000000e+00 : f32
    %16 = vector.broadcast %cst_11 : f32 to vector<16x384xf32>
    %17 = arith.maximumf %15, %16 : vector<16x384xf32>
    %18 = arith.truncf %17 : vector<16x384xf32> to vector<16x384xbf16>
    %c0_12 = arith.constant 0 : index
    %c0_13 = arith.constant 0 : index
    %19 = vector.load %arg4[%c0_12, %c0_13] : memref<384x128xbf16, #tpu.memory_space<vmem>>, vector<384x128xbf16>
    %cst_14 = arith.constant dense<0.000000e+00> : vector<16x128xf32>
    %20 = tpu.matmul %18, %19, %cst_14 {dimension_numbers = #tpu.dot_dimension_numbers<[1], [0], [0], [1], [0, 0, 1, 1], [], []>} : vector<16x384xbf16>, vector<384x128xbf16>, vector<16x128xf32> -> vector<16x128xf32>
    %21 = vector.broadcast %2 : vector<1x128xf32> to vector<16x128xf32>
    %22 = arith.addf %20, %21 : vector<16x128xf32>
    %23 = arith.truncf %22 : vector<16x128xf32> to vector<16x128xbf16>
    %c0_15 = arith.constant 0 : index
    %c0_16 = arith.constant 0 : index
    %24 = vector.load %arg6[%c0_15, %c0_16] : memref<16x128xbf16, #tpu.memory_space<vmem>>, vector<16x128xbf16>
    tpu.vector_store %arg6[%c0_15, %c0_16], %23 {strides = array<i32>} : memref<16x128xbf16, #tpu.memory_space<vmem>>, vector<16x128xbf16>,
    return
  }
  func.func @transform_0(%arg0: i32) -> (i32, i32) {
    %c0_i32 = arith.constant 0 : i32
    %c0_i32_0 = arith.constant 0 : i32
    return %arg0, %c0_i32 : i32, i32
  }
  func.func @transform_1(%arg0: i32) -> (i32, i32) {
    %c0_i32 = arith.constant 0 : i32
    %c0_i32_0 = arith.constant 0 : i32
    %c0_i32_1 = arith.constant 0 : i32
    return %c0_i32, %c0_i32_0 : i32, i32
  }
  func.func @transform_2(%arg0: i32) -> (i32, i32) {
    %c0_i32 = arith.constant 0 : i32
    %c0_i32_0 = arith.constant 0 : i32
    %c0_i32_1 = arith.constant 0 : i32
    return %c0_i32, %c0_i32_0 : i32, i32
  }
  func.func @transform_3(%arg0: i32) -> (i32, i32) {
    %c0_i32 = arith.constant 0 : i32
    %c0_i32_0 = arith.constant 0 : i32
    %c0_i32_1 = arith.constant 0 : i32
    return %c0_i32, %c0_i32_0 : i32, i32
  }
  func.func @transform_4(%arg0: i32) -> (i32, i32) {
    %c0_i32 = arith.constant 0 : i32
    %c0_i32_0 = arith.constant 0 : i32
    %c0_i32_1 = arith.constant 0 : i32
    return %c0_i32, %c0_i32_0 : i32, i32
  }
  func.func @transform_5(%arg0: i32) -> (i32, i32) {
    %c0_i32 = arith.constant 0 : i32
    %c0_i32_0 = arith.constant 0 : i32
    return %arg0, %c0_i32 : i32, i32
  }
}

</mosaic_0001>

<bundles_post_ra>
// kernel: tpu_custom_call.1
= control target key start
LH: loop header
LB: loop body
LE: loop exit
PB: predicated region body
PF: predicated region fallthrough
CT: control target
= control target key end

     0   :  { %10 = vsyncpa [#allocation3], 0  ;;  %s1961_s0 = inlined_call_operand.vmem [shape: f32[16,3], index: 0, kind: input, shape index: {}]   ;;  %s1962_s1 = inlined_call_operand.vmem [shape: bf16[3,512], index: 1, kind: input, shape index: {}]   ;;  %s1963_s2 = inlined_call_operand.hbm [shape: bf16[512,384], index: 2, kind: input, shape index: {}]   ;;  %s1964_s3 = inlined_call_operand.hbm [shape: bf16[384,128], index: 3, kind: input, shape index: {}]   ;;  %s1965_s4 = inlined_call_operand.vmem [shape: f32[1,1024], index: 4, kind: input, shape index: {}]   ;;  %s1966_s5 = inlined_call_operand.hbm [shape: bf16[16,128], index: 5, kind: output, shape index: {}]  }
   0x1   :  { %11 = vsyncpa [#allocation6], 0 }
   0x2   :  { %12 = vsyncpa [#allocation4], 0  ;;  %s1827_s18 = smov [#allocation2]   ;;  %s1755_s22 = scalar_lea.hbm %s1963_s2, 12288 }
   0x3   :  { %s22_s19 = sshll.u32 %s1827_s18, 4  ;;  %p1756_p0 = scmp.ne.s32.totalorder %s1963_s2, %s1755_s22  ;;  %s23_s19 = int_to_ptr.vmem [resolvable:$true] %s22_s19 }
   0x4   :  { %p1759_p1 = scmp.lt.u32.totalorder %s1755_s22, %s1963_s2 }
   0x6   :  { %p1761_p2 = pnand %p1759_p1, %p1756_p0 }
   0x8   :  { %1764 = shalt.err (!%p1761_p2)
}
   0x9   :  { %s1765_s27 = scalar_lea.vmem %s23_s19, 12288  ;;  %p1770_p4 = scmp.lt.s32.totalorder %s23_s19, %s23_s19 }
   0xa   :  { %p1766_p3 = scmp.ne.s32.totalorder %s23_s19, %s1765_s27  ;;  %p1771_p5 = scmp.lt.s32.totalorder %s1765_s27, %s1765_s27 }
   0xc   :  { %p1772_p6 = por %p1771_p5, %p1770_p4 }
   0xe   :  { %p1773_p7 = pnand %p1772_p6, %p1766_p3 }
  0x10   :  { %1776 = shalt.err (!%p1773_p7)
}
  0x11   :  { %s1828_s28 = smov 192   ;;  %s1829_s29 = smov 12  }
  0x12   :  { %28 = dma.hbm_to_vmem [thread:$0]  %s1963_s2, 12288, %s23_s19, [#allocation3], %s1828_s28, %s1828_s28, %s1829_s29  }
  0x13   :  { %s1830_s7 = smov [#allocation5]   ;;  %s1777_s11 = scalar_lea.hbm %s1964_s3, 3072 }
  0x14   :  { %s34_s8 = sshll.u32 %s1830_s7, 4  ;;  %p1778_p8 = scmp.ne.s32.totalorder %s1964_s3, %s1777_s11  ;;  %s35_s8 = int_to_ptr.vmem [resolvable:$true] %s34_s8 }
  0x15   :  { %p1781_p9 = scmp.lt.u32.totalorder %s1777_s11, %s1964_s3 }
  0x17   :  { %p1783_p10 = pnand %p1781_p9, %p1778_p8 }
  0x19   :  { %1786 = shalt.err (!%p1783_p10)
}
  0x1a   :  { %s1787_s16 = scalar_lea.vmem %s35_s8, 3072  ;;  %p1792_p12 = scmp.lt.s32.totalorder %s35_s8, %s35_s8 }
  0x1b   :  { %p1788_p11 = scmp.ne.s32.totalorder %s35_s8, %s1787_s16  ;;  %p1793_p13 = scmp.lt.s32.totalorder %s1787_s16, %s1787_s16 }
  0x1d   :  { %p1794_p0 = por %p1793_p13, %p1792_p12 }
  0x1f   :  { %p1795_p1 = pnand %p1794_p0, %p1788_p11 }
  0x21   :  { %1798 = shalt.err (!%p1795_p1)
}
  0x22   :  { %s1831_s2 = smov 64   ;;  %s1832_s17 = smov 4  }
  0x23   :  { %40 = dma.hbm_to_vmem [thread:$0]  %s1964_s3, 3072, %s35_s8, [#allocation6], %s1831_s2, %s1831_s2, %s1832_s17  }
  0x24   :  { %1821 = dma.done.wait [#allocation3], 12288  }
  0x25   :  { %1822 = vsyncadd [#allocation3], 4294955008 }
  0x26   :  { %1823 = dma.done.wait [#allocation6], 3072  }
  0x27   :  { %1824 = vsyncadd [#allocation6], 4294964224  ;;  %v58_v0 = vlaneseq  ;;  %v1833_v1 = vmov 1983009808   ;;  %vm100_vm0 = vcmask 1040384   ;;  %v1834_v4 = vmov 0  }
  0x28   :  { %v81_v2 = vunpack.c.l.s4 %v1833_v1  ;;  %148 = vmatprep.mubr.bf16.mxu0 %v1834_v4  ;;  %191 = vmatprep.mubr.bf16.mxu1 %v1834_v4  ;;  %vm101_vm1 = vcmask 1041408   ;;  %v1835_v7 = vmov 65535   ;;  %v56_v9 = vld [vmem:[%s1962_s1] sm:$0xff]  ;;  %v54_v17 = vld [vmem:[%s1961_s0 + $0x8] sm:$0xff]  ;;  %vm96_vm2 = vcmask 23552   ;;  %s1838_s29 = smov [#allocation7]  }
  0x29   :  { %v1896_v3 = vshrl.u32 %v58_v0, 7  ;;  %v102_v8 = vsel %vm100_vm0, 4294967295, %v1835_v7  ;;  %v79_v12 = vcombine.high %v56_v9, %v56_v9  ;;  %v53_v16 = vld [vmem:[%s1961_s0] sm:$0xff]  ;;  %v1608_v25 = vld [vmem:[#allocation2 + $0x1c] ss:$12 sps:$4 sm:$0xff]   ;;  %vm1837_vm3 = vmmov 0  }
  0x2a   :  { %v82_v5 = vunpack.c.0.s8 %v81_v2  ;;  %v103_v11 = vsel %vm101_vm1, %v102_v8, 0  ;;  %v1605_v20 = vld [vmem:[#allocation2 + $0x4] ss:$12 sps:$4 sm:$0xff]   ;;  %v55_v22 = vpack.c.bf16 %v54_v17, %v53_v16  ;;  %v1603_v24 = vld [vmem:[#allocation2] ss:$12 sps:$4 sm:$0xff]   ;;  %s1342_s30 = sshll.u32 %s1838_s29, 4  ;;  %s1343_s30 = int_to_ptr.vmem [resolvable:$true] %s1342_s30 }
  0x2b   :  { %v1606_v26 = vld [vmem:[#allocation2 + $0x18] ss:$12 sps:$4 sm:$0xff]   ;;  %v1611_v27 = vld [vmem:[#allocation2 + $0x34] ss:$12 sps:$4 sm:$0xff]   ;;  %v1609_v30 = vld [vmem:[#allocation2 + $0x30] ss:$12 sps:$4 sm:$0xff]   ;;  %p1804_p3 = scmp.lt.s32.totalorder %s1343_s30, %s1343_s30 }
  0x2c   :  { %v85_v6 = vsub.s32 %v82_v5, %v1896_v3  ;;  %v1630_v28 = vld [vmem:[#allocation2 + $0xc8] ss:$12 sps:$4 sm:$0xff]   ;;  %v1614_v31 = vld [vmem:[#allocation2 + $0x4c] ss:$12 sps:$4 sm:$0xff]   ;;  %v1617_v35 = vld [vmem:[#allocation2 + $0x64] ss:$12 sps:$4 sm:$0xff]  }
  0x2d   :  { %v1631_v29 = vld [vmem:[#allocation2 + $0x8] ss:$12 sps:$4 sm:$0xff]   ;;  %v1635_v32 = vld [vmem:[#allocation2 + $0xe0] ss:$12 sps:$4 sm:$0xff]   ;;  %v1640_v36 = vld [vmem:[#allocation2 + $0xf8] ss:$12 sps:$4 sm:$0xff]  }
  0x2e   :  { %v86_v10 = vrot.slane %v56_v9, %v85_v6  ;;  %v93_v14 = vrot.slane %v79_v12, %v85_v6  ;;  %v1636_v33 = vld [vmem:[#allocation2 + $0x20] ss:$12 sps:$4 sm:$0xff]   ;;  %v1612_v34 = vld [vmem:[#allocation2 + $0x48] ss:$12 sps:$4 sm:$0xff]   ;;  %v1641_v37 = vld [vmem:[#allocation2 + $0x38] ss:$12 sps:$4 sm:$0xff]  }
  0x2f   :  { %v1615_v38 = vld [vmem:[#allocation2 + $0x60] ss:$12 sps:$4 sm:$0xff]   ;;  %v1645_v39 = vld [vmem:[#allocation2 + $0x110] ss:$12 sps:$4 sm:$0xff]   ;;  %v1618_v42 = vld [vmem:[#allocation2 + $0x78] ss:$12 sps:$4 sm:$0xff]  }
  0x30   :  { %v94_v13 = vcombine.high %v86_v10, %v86_v10  ;;  %v105_v15 = vand.u32 %v103_v11, %v86_v10  ;;  %v95_v19 = vcombine.high %v93_v14, %v93_v14  ;;  %v111_v21 = vand.u32 %v103_v11, %v93_v14  ;;  %v1646_v40 = vld [vmem:[#allocation2 + $0x50] ss:$12 sps:$4 sm:$0xff]   ;;  %v1650_v43 = vld [vmem:[#allocation2 + $0x128] ss:$12 sps:$4 sm:$0xff]   ;;  %v1655_v47 = vld [vmem:[#allocation2 + $0x140] ss:$12 sps:$4 sm:$0xff]  }
  0x31   :  { %v1620_v41 = vld [vmem:[#allocation2 + $0x7c] ss:$12 sps:$4 sm:$0xff]   ;;  %v1623_v45 = vld [vmem:[#allocation2 + $0x94] ss:$12 sps:$4 sm:$0xff]   ;;  %v1626_v48 = vld [vmem:[#allocation2 + $0xac] ss:$12 sps:$4 sm:$0xff]  }
  0x32   :  { %v108_v18 = vand.u32 %v103_v11, %v94_v13  ;;  %v114_v23 = vand.u32 %v103_v11, %v95_v19  ;;  %v1651_v44 = vld [vmem:[#allocation2 + $0x68] ss:$12 sps:$4 sm:$0xff]   ;;  %v1621_v46 = vld [vmem:[#allocation2 + $0x90] ss:$12 sps:$4 sm:$0xff]   ;;  %v1656_v49 = vld [vmem:[#allocation2 + $0x80] ss:$12 sps:$4 sm:$0xff]  }
  0x33   :  { %v1624_v50 = vld [vmem:[#allocation2 + $0xa8] ss:$12 sps:$4 sm:$0xff]   ;;  %v1629_v51 = vld [vmem:[#allocation2 + $0xc4] ss:$12 sps:$4 sm:$0xff]   ;;  %v1627_v52 = vld [vmem:[#allocation2 + $0xc0] ss:$12 sps:$4 sm:$0xff]  }
  0x34   :  { %116 = vmatprep.subr.bf16.mxu0 %v108_v18  ;;  %159 = vmatprep.subr.bf16.mxu1 %v114_v23  ;;  %v1634_v53 = vld [vmem:[#allocation2 + $0xdc] ss:$12 sps:$4 sm:$0xff]   ;;  %v1632_v54 = vld [vmem:[#allocation2 + $0xd8] ss:$12 sps:$4 sm:$0xff]   ;;  %v1639_v55 = vld [vmem:[#allocation2 + $0xf4] ss:$12 sps:$4 sm:$0xff]  }
  0x35   :  { %117 = vmatpush1.bf16.msra.mxu0 %v105_v15  ;;  %160 = vmatpush1.bf16.msra.mxu1 %v111_v21  ;;  %v1637_v56 = vld [vmem:[#allocation2 + $0xf0] ss:$12 sps:$4 sm:$0xff]   ;;  %v1644_v57 = vld [vmem:[#allocation2 + $0x10c] ss:$12 sps:$4 sm:$0xff]   ;;  %v1642_v58 = vld [vmem:[#allocation2 + $0x108] ss:$12 sps:$4 sm:$0xff]  }
  0x36   :  { %870 = vmatprep.subr.bf16.mxu0 %v1605_v20  ;;  %1487 = vmatprep.subr.bf16.mxu1 %v1630_v28  ;;  %v1649_v59 = vld [vmem:[#allocation2 + $0x124] ss:$12 sps:$4 sm:$0xff]   ;;  %v1647_v60 = vld [vmem:[#allocation2 + $0x120] ss:$12 sps:$4 sm:$0xff]   ;;  %v1654_v61 = vld [vmem:[#allocation2 + $0x13c] ss:$12 sps:$4 sm:$0xff]  }
  0x37   :  { %v1652_v62 = vld [vmem:[#allocation2 + $0x138] ss:$12 sps:$4 sm:$0xff]   ;;  %v1659_v63 = vld [vmem:[#allocation2 + $0x154] ss:$12 sps:$4 sm:$0xff]   ;;  %v1657_v1 = vld [vmem:[#allocation2 + $0x150] ss:$12 sps:$4 sm:$0xff]  }
  0x38   :  { %1355 = vmatmul.mubr.msk.bf16.vlgmr.msra.gmra.mrb[0].mxu0 %vm96_vm2, %v55_v22  ;;  %1356 = vmatmul.mubr.msk.bf16.vlgmr.msra.gmra.mrb[0].mxu1 %vm96_vm2, %v55_v22  ;;  %v1660_v0 = vld [vmem:[#allocation2 + $0x158] ss:$12 sps:$4 sm:$0xff]   ;;  %v1665_v5 = vld [vmem:[#allocation2 + $0x170] ss:$12 sps:$4 sm:$0xff]   ;;  %v1662_v6 = vld [vmem:[#allocation2 + $0x168] ss:$12 sps:$4 sm:$0xff]  }
  0x39   :  { %871 = vmatpush1.bf16.msra.mxu0 %v1603_v24  ;;  %1488 = vmatpush3.bf16.msra.mxu1 %v1631_v29  ;;  %v1661_v2 = vld [vmem:[#allocation2 + $0x98] ss:$12 sps:$4 sm:$0xff]   ;;  %v1666_v7 = vld [vmem:[#allocation2 + $0xb0] ss:$12 sps:$4 sm:$0xff]   ;;  %v1670_v9 = vld [vmem:[#allocation2 + $0x248] ss:$12 sps:$4 sm:$0xff]  }
  0x3a   :  { %872 = vmatprep.subr.bf16.mxu0 %v1608_v25  ;;  %1489 = vmatprep.subr.bf16.mxu1 %v1635_v32  ;;  %v1664_v4 = vld [vmem:[#allocation2 + $0x16c] ss:$12 sps:$4 sm:$0xff]   ;;  %v1669_v8 = vld [vmem:[#allocation2 + $0x184] ss:$12 sps:$4 sm:$0xff]   ;;  %v60_v10 = vsub.s32 0, %v1896_v3  ;;  %v64_v12 = vsub.s32 1, %v1896_v3 }
  0x3b   :  { %v50_v11 = vld [vmem:[%s1965_s4] sm:$0xf]  ;;  %v68_v13 = vsub.s32 2, %v1896_v3  ;;  %v72_v14 = vsub.s32 3, %v1896_v3  ;;  %v1748_v3 = vld [vmem:[#allocation5 + $0x88] sm:$0xff]   ;;  %s1799_s6 = scalar_lea.vmem %s1343_s30, 128 }
  0x3c   :  { %v61_v15 = vrot.slane %v50_v11, %v60_v10  ;;  %v65_v16 = vrot.slane %v50_v11, %v64_v12  ;;  %p1800_p2 = scmp.ne.s32.totalorder %s1343_s30, %s1799_s6  ;;  %p1805_p4 = scmp.lt.s32.totalorder %s1799_s6, %s1799_s6 }
  0x3d   :  { %873 = vmatpush1.bf16.msra.mxu0 %v1606_v26  ;;  %1490 = vmatpush3.bf16.msra.mxu1 %v1636_v33  ;;  %v69_v17 = vrot.slane %v50_v11, %v68_v13  ;;  %v73_v19 = vrot.slane %v50_v11, %v72_v14  ;;  %v1704_v11 = vld [vmem:[#allocation2 + $0x22c] ss:$12 sps:$4 sm:$0xff]   ;;  %v1705_v14 = vld [vmem:[#allocation2 + $0x2f0] ss:$12 sps:$4 sm:$0xff]  }
  0x3e   :  { %874 = vmatprep.subr.bf16.mxu0 %v1611_v27  ;;  %1491 = vmatprep.subr.bf16.mxu1 %v1640_v36  ;;  %p1806_p5 = por %p1805_p4, %p1804_p3 }
  0x40   :  { %p1807_p6 = pnand %p1806_p5, %p1800_p2 }
  0x41   :  { %875 = vmatpush1.bf16.msra.mxu0 %v1609_v30  ;;  %1492 = vmatpush3.bf16.msra.mxu1 %v1641_v37 }
  0x42   :  { %876 = vmatprep.subr.bf16.mxu0 %v1614_v31  ;;  %1493 = vmatprep.subr.bf16.mxu1 %v1645_v39 }
  0x45   :  { %877 = vmatpush1.bf16.msra.mxu0 %v1612_v34  ;;  %1494 = vmatpush3.bf16.msra.mxu1 %v1646_v40 }
  0x46   :  { %878 = vmatprep.subr.bf16.mxu0 %v1617_v35  ;;  %1495 = vmatprep.subr.bf16.mxu1 %v1650_v43 }
  0x49   :  { %879 = vmatpush1.bf16.msra.mxu0 %v1615_v38  ;;  %1496 = vmatpush3.bf16.msra.mxu1 %v1651_v44  ;;  %v1667_v44 = vld [vmem:[#allocation2 + $0x180] ss:$12 sps:$4 sm:$0xff]  }
  0x4a   :  { %880 = vmatprep.subr.bf16.mxu0 %v1620_v41  ;;  %1497 = vmatprep.subr.bf16.mxu1 %v1655_v47  ;;  %v1674_v47 = vld [vmem:[#allocation2 + $0x19c] ss:$12 sps:$4 sm:$0xff]  }
  0x4d   :  { %881 = vmatpush1.bf16.msra.mxu0 %v1618_v42  ;;  %1498 = vmatpush3.bf16.msra.mxu1 %v1656_v49 }
  0x4e   :  { %882 = vmatprep.subr.bf16.mxu0 %v1623_v45  ;;  %1499 = vmatprep.subr.bf16.mxu1 %v1660_v0  ;;  %v1671_v45 = vld [vmem:[#allocation2 + $0x188] ss:$12 sps:$4 sm:$0xff]  }
  0x4f   :  { %v1691_v0 = vld [vmem:[#allocation2 + $0x1e8] ss:$12 sps:$4 sm:$0xff]  }
  0x51   :  { %883 = vmatpush1.bf16.msra.mxu0 %v1621_v46  ;;  %1500 = vmatpush3.bf16.msra.mxu1 %v1661_v2  ;;  %v1695_v2 = vld [vmem:[#allocation2 + $0x2c0] ss:$12 sps:$4 sm:$0xff]  }
  0x52   :  { %884 = vmatprep.subr.bf16.mxu0 %v1626_v48  ;;  %1501 = vmatprep.subr.bf16.mxu1 %v1665_v5  ;;  %v1675_v48 = vld [vmem:[#allocation2 + $0x260] ss:$12 sps:$4 sm:$0xff]  }
  0x53   :  { %v1696_v5 = vld [vmem:[#allocation2 + $0x200] ss:$12 sps:$4 sm:$0xff]  }
  0x55   :  { %885 = vmatpush1.bf16.msra.mxu0 %v1624_v50  ;;  %1502 = vmatpush3.bf16.msra.mxu1 %v1666_v7  ;;  %v1700_v7 = vld [vmem:[#allocation2 + $0x2d8] ss:$12 sps:$4 sm:$0xff]  }
  0x56   :  { %886 = vmatprep.subr.bf16.mxu0 %v1629_v51  ;;  %1509 = vmatprep.subr.bf16.mxu1 %v1670_v9  ;;  %v1672_v51 = vld [vmem:[#allocation2 + $0x198] ss:$12 sps:$4 sm:$0xff]  }
  0x57   :  { %v1701_v9 = vld [vmem:[#allocation2 + $0x218] ss:$12 sps:$4 sm:$0xff]  }
  0x59   :  { %887 = vmatpush1.bf16.msra.mxu0 %v1627_v52  ;;  %v1676_v52 = vld [vmem:[#allocation2 + $0x1a0] ss:$12 sps:$4 sm:$0xff]  }
  0x5a   :  { %888 = vmatprep.subr.bf16.mxu0 %v1634_v53  ;;  %v1679_v53 = vld [vmem:[#allocation2 + $0x1b4] ss:$12 sps:$4 sm:$0xff]  }
  0x5d   :  { %889 = vmatpush1.bf16.msra.mxu0 %v1632_v54  ;;  %v1680_v54 = vld [vmem:[#allocation2 + $0x278] ss:$12 sps:$4 sm:$0xff]  }
  0x5e   :  { %890 = vmatprep.subr.bf16.mxu0 %v1639_v55  ;;  %v1677_v55 = vld [vmem:[#allocation2 + $0x1b0] ss:$12 sps:$4 sm:$0xff]  }
  0x61   :  { %891 = vmatpush1.bf16.msra.mxu0 %v1637_v56  ;;  %v1681_v56 = vld [vmem:[#allocation2 + $0x1b8] ss:$12 sps:$4 sm:$0xff]  }
  0x62   :  { %892 = vmatprep.subr.bf16.mxu0 %v1644_v57  ;;  %v1684_v57 = vld [vmem:[#allocation2 + $0x1cc] ss:$12 sps:$4 sm:$0xff]  }
  0x65   :  { %893 = vmatpush1.bf16.msra.mxu0 %v1642_v58  ;;  %v1685_v58 = vld [vmem:[#allocation2 + $0x290] ss:$12 sps:$4 sm:$0xff]  }
  0x66   :  { %894 = vmatprep.subr.bf16.mxu0 %v1649_v59  ;;  %v1682_v59 = vld [vmem:[#allocation2 + $0x1c8] ss:$12 sps:$4 sm:$0xff]  }
  0x69   :  { %895 = vmatpush1.bf16.msra.mxu0 %v1647_v60  ;;  %v1686_v60 = vld [vmem:[#allocation2 + $0x1d0] ss:$12 sps:$4 sm:$0xff]  }
  0x6a   :  { %896 = vmatprep.subr.bf16.mxu0 %v1654_v61  ;;  %v1689_v61 = vld [vmem:[#allocation2 + $0x1e4] ss:$12 sps:$4 sm:$0xff]  }
  0x6d   :  { %897 = vmatpush1.bf16.msra.mxu0 %v1652_v62  ;;  %v1690_v62 = vld [vmem:[#allocation2 + $0x2a8] ss:$12 sps:$4 sm:$0xff]  }
  0x6e   :  { %898 = vmatprep.subr.bf16.mxu0 %v1659_v63  ;;  %v1687_v63 = vld [vmem:[#allocation2 + $0x1e0] ss:$12 sps:$4 sm:$0xff]  }
  0x71   :  { %899 = vmatpush1.bf16.msra.mxu0 %v1657_v1  ;;  %v1694_v1 = vld [vmem:[#allocation2 + $0x1fc] ss:$12 sps:$4 sm:$0xff]  }
  0x72   :  { %900 = vmatprep.subr.bf16.mxu0 %v1664_v4  ;;  %v1692_v4 = vld [vmem:[#allocation2 + $0x1f8] ss:$12 sps:$4 sm:$0xff]  }
  0x75   :  { %901 = vmatpush1.bf16.msra.mxu0 %v1662_v6  ;;  %v1699_v6 = vld [vmem:[#allocation2 + $0x214] ss:$12 sps:$4 sm:$0xff]  }
  0x76   :  { %913 = vmatprep.subr.bf16.mxu0 %v1669_v8  ;;  %v1697_v8 = vld [vmem:[#allocation2 + $0x210] ss:$12 sps:$4 sm:$0xff]  }
 0x10b   :  { %v150_v18 = vpop.f32.mrb[0].mxu0  ;;  %v193_v24 = vpop.f32.mrb[0].mxu1 }
 0x10c   :  { %v151_v20 = vadd.f32 %v150_v18, %v61_v15  ;;  %v152_v21 = vpop.f32.mrb[1].mxu0  ;;  %v194_v27 = vadd.f32 %v193_v24, %v69_v17  ;;  %v195_v28 = vpop.f32.mrb[1].mxu1  ;;  %v1707_v18 = vld [vmem:[#allocation2 + $0x240] ss:$12 sps:$4 sm:$0xff]   ;;  %v1716_v24 = vld [vmem:[#allocation2 + $0x288] ss:$12 sps:$4 sm:$0xff]  }
 0x10d   :  { %v153_v22 = vadd.f32 %v152_v21, %v65_v16  ;;  %v154_v23 = vpop.f32.mrb[2].mxu0  ;;  %v196_v30 = vadd.f32 %v195_v28, %v73_v19  ;;  %v197_v31 = vpop.f32.mrb[2].mxu1  ;;  %v1715_v21 = vld [vmem:[#allocation2 + $0x274] ss:$12 sps:$4 sm:$0xff]   ;;  %v1722_v28 = vld [vmem:[#allocation2 + $0x2b8] ss:$12 sps:$4 sm:$0xff]  }
 0x10e   :  { %v155_v25 = vadd.f32 %v154_v23, %v61_v15  ;;  %v156_v26 = vpop.f32.mrb[3].mxu0  ;;  %v202_v32 = vmax.f32 %v151_v20, 0.0  ;;  %v204_v34 = vmax.f32 %v194_v27, 0.0  ;;  %v198_v35 = vadd.f32 %v197_v31, %v69_v17  ;;  %v199_v36 = vpop.f32.mrb[3].mxu1  ;;  %v1702_v15 = vld [vmem:[#allocation2 + $0x228] ss:$12 sps:$4 sm:$0xff]  }
 0x10f   :  { %v157_v29 = vadd.f32 %v156_v26, %v65_v16  ;;  %v203_v37 = vmax.f32 %v153_v22, 0.0  ;;  %v205_v39 = vmax.f32 %v196_v30, 0.0  ;;  %v200_v40 = vadd.f32 %v199_v36, %v73_v19  ;;  %v1706_v16 = vld [vmem:[#allocation2 + $0x230] ss:$12 sps:$4 sm:$0xff]   ;;  %v1710_v20 = vld [vmem:[#allocation2 + $0x258] ss:$12 sps:$4 sm:$0xff]  }
 0x110   :  { %v206_v33 = vmax.f32 %v155_v25, 0.0  ;;  %v208_v42 = vmax.f32 %v198_v35, 0.0  ;;  %v1709_v17 = vld [vmem:[#allocation2 + $0x244] ss:$12 sps:$4 sm:$0xff]   ;;  %v1712_v19 = vld [vmem:[#allocation2 + $0x25c] ss:$12 sps:$4 sm:$0xff]  }
 0x111   :  { %v207_v38 = vmax.f32 %v157_v29, 0.0  ;;  %v209_v46 = vmax.f32 %v200_v40, 0.0  ;;  %v1713_v22 = vld [vmem:[#allocation2 + $0x270] ss:$12 sps:$4 sm:$0xff]   ;;  %v1718_v23 = vld [vmem:[#allocation2 + $0x28c] ss:$12 sps:$4 sm:$0xff]  }
 0x112   :  { %v210_v41 = vpack.c.bf16 %v206_v33, %v202_v32  ;;  %v1921_v49 = vpack.c.bf16 %v208_v42, %v204_v34  ;;  %v1721_v25 = vld [vmem:[#allocation2 + $0x2a4] ss:$12 sps:$4 sm:$0xff]   ;;  %v1719_v26 = vld [vmem:[#allocation2 + $0x2a0] ss:$12 sps:$4 sm:$0xff]   ;;  %v1724_v27 = vld [vmem:[#allocation2 + $0x2bc] ss:$12 sps:$4 sm:$0xff]  }
 0x113   :  { %v211_v43 = vpack.c.bf16 %v207_v38, %v203_v37  ;;  %v213_v50 = vpack.c.bf16 %v209_v46, %v205_v39  ;;  %v1727_v29 = vld [vmem:[#allocation2 + $0x2d4] ss:$12 sps:$4 sm:$0xff]   ;;  %v1725_v30 = vld [vmem:[#allocation2 + $0x2d0] ss:$12 sps:$4 sm:$0xff]   ;;  %v1730_v31 = vld [vmem:[#allocation2 + $0x2ec] ss:$12 sps:$4 sm:$0xff]  }
 0x114   :  { %v1728_v32 = vld [vmem:[#allocation2 + $0x2e8] ss:$12 sps:$4 sm:$0xff]   ;;  %v1731_v33 = vld [vmem:[#allocation5 + $0x40] sm:$0xff]   ;;  %v1737_v39 = vld [vmem:[#allocation5 + $0x58] sm:$0xff]  }
 0x115   :  { %902 = vmatprep.mubr.bf16.mxu0 %v211_v43  ;;  %988 = vmatprep.mubr.bf16.mxu1 %v211_v43  ;;  %v1732_v34 = vld [vmem:[#allocation5] sm:$0xff]   ;;  %v1733_v35 = vld [vmem:[#allocation5 + $0x48] sm:$0xff]   ;;  %v1735_v37 = vld [vmem:[#allocation5 + $0x50] sm:$0xff]  }
 0x116   :  { %903 = vmatmul.mubr.bf16.vlgmr.msra.gmra.mrb[4].mxu0 %v210_v41  ;;  %989 = vmatmul.mubr.bf16.vlgmr.msra.gmra.mrb[4].mxu1 %v210_v41  ;;  %v1734_v36 = vld [vmem:[#allocation5 + $0x8] sm:$0xff]   ;;  %v1736_v38 = vld [vmem:[#allocation5 + $0x10] sm:$0xff]   ;;  %v1738_v40 = vld [vmem:[#allocation5 + $0x18] sm:$0xff]  }
 0x117   :  { %914 = vmatpush1.bf16.msra.mxu0 %v1667_v44  ;;  %1510 = vmatpush3.bf16.msra.mxu1 %v1671_v45  ;;  %v1739_v41 = vld [vmem:[#allocation5 + $0x60] sm:$0xff]   ;;  %v1741_v43 = vld [vmem:[#allocation5 + $0x68] sm:$0xff]   ;;  %v1743_v45 = vld [vmem:[#allocation5 + $0x70] sm:$0xff]  }
 0x118   :  { %915 = vmatprep.subr.bf16.mxu0 %v1674_v47  ;;  %1511 = vmatprep.subr.bf16.mxu1 %v1675_v48  ;;  %v1740_v42 = vld [vmem:[#allocation5 + $0x20] sm:$0xff]   ;;  %v1742_v44 = vld [vmem:[#allocation5 + $0x28] sm:$0xff]   ;;  %v1744_v46 = vld [vmem:[#allocation5 + $0x30] sm:$0xff]  }
 0x119   :  { %1029 = vmatprep.mubr.bf16.mxu1 %v213_v50  ;;  %945 = vmatprep.mubr.bf16.mxu0 %v213_v50  ;;  %v1745_v47 = vld [vmem:[#allocation5 + $0x78] sm:$0xff]  }
 0x11a   :  { %v1746_v48 = vld [vmem:[#allocation5 + $0x38] sm:$0xff]  }
 0x11b   :  { %916 = vmatpush1.bf16.msra.mxu0 %v1672_v51  ;;  %1512 = vmatpush3.bf16.msra.mxu1 %v1676_v52 }
 0x11c   :  { %917 = vmatprep.subr.bf16.mxu0 %v1679_v53  ;;  %1513 = vmatprep.subr.bf16.mxu1 %v1680_v54 }
 0x11f   :  { %918 = vmatpush1.bf16.msra.mxu0 %v1677_v55  ;;  %1514 = vmatpush3.bf16.msra.mxu1 %v1681_v56  ;;  %v51_v56 = vld [vmem:[%s1965_s4 + $0x4] sm:$0x7] }
 0x120   :  { %919 = vmatprep.subr.bf16.mxu0 %v1684_v57  ;;  %1515 = vmatprep.subr.bf16.mxu1 %v1685_v58  ;;  %v354_v57 = vrot.slane %v51_v56, %v68_v13 }
 0x123   :  { %920 = vmatpush1.bf16.msra.mxu0 %v1682_v59  ;;  %1516 = vmatpush3.bf16.msra.mxu1 %v1686_v60 }
 0x124   :  { %921 = vmatprep.subr.bf16.mxu0 %v1689_v61  ;;  %1517 = vmatprep.subr.bf16.mxu1 %v1690_v62 }
 0x127   :  { %922 = vmatpush1.bf16.msra.mxu0 %v1687_v63  ;;  %1518 = vmatpush3.bf16.msra.mxu1 %v1691_v0 }
 0x128   :  { %923 = vmatprep.subr.bf16.mxu0 %v1694_v1  ;;  %1519 = vmatprep.subr.bf16.mxu1 %v1695_v2 }
 0x12b   :  { %924 = vmatpush1.bf16.msra.mxu0 %v1692_v4  ;;  %1520 = vmatpush3.bf16.msra.mxu1 %v1696_v5 }
 0x12c   :  { %925 = vmatprep.subr.bf16.mxu0 %v1699_v6  ;;  %1521 = vmatprep.subr.bf16.mxu1 %v1700_v7 }
 0x12f   :  { %926 = vmatpush1.bf16.msra.mxu0 %v1697_v8  ;;  %1522 = vmatpush3.bf16.msra.mxu1 %v1701_v9  ;;  %v346_v8 = vrot.slane %v51_v56, %v60_v10  ;;  %v350_v9 = vrot.slane %v51_v56, %v64_v12  ;;  %v1749_v10 = vld [vmem:[#allocation5 + $0x90] sm:$0xff]   ;;  %v1750_v12 = vld [vmem:[#allocation5 + $0x98] sm:$0xff]  }
 0x130   :  { %927 = vmatprep.subr.bf16.mxu0 %v1704_v11  ;;  %1523 = vmatprep.subr.bf16.mxu1 %v1705_v14 }
 0x133   :  { %928 = vmatpush1.bf16.msra.mxu0 %v1702_v15  ;;  %1524 = vmatpush3.bf16.msra.mxu1 %v1706_v16 }
 0x134   :  { %929 = vmatprep.subr.bf16.mxu0 %v1709_v17  ;;  %1531 = vmatprep.subr.bf16.mxu1 %v1731_v33 }
 0x136   :  { %1030 = vmatmul.mubr.bf16.vlgmr.msra.gmra.mrb[8].mxu1 %v1921_v49 }
 0x137   :  { %930 = vmatpush1.bf16.msra.mxu0 %v1707_v18  ;;  %1532 = vmatpush3.bf16.msra.mxu1 %v1732_v34 }
 0x138   :  { %931 = vmatprep.subr.bf16.mxu0 %v1712_v19  ;;  %1533 = vmatprep.subr.bf16.mxu1 %v1733_v35 }
 0x13b   :  { %932 = vmatpush1.bf16.msra.mxu0 %v1710_v20  ;;  %1534 = vmatpush3.bf16.msra.mxu1 %v1734_v36 }
 0x13c   :  { %933 = vmatprep.subr.bf16.mxu0 %v1715_v21  ;;  %1535 = vmatprep.subr.bf16.mxu1 %v1735_v37  ;;  %v1453_v37 = vld [vmem:[%s1965_s4 + $0x7] ss:$0 sm:$0xff] }
 0x13f   :  { %934 = vmatpush1.bf16.msra.mxu0 %v1713_v22  ;;  %1536 = vmatpush3.bf16.msra.mxu1 %v1736_v38 }
 0x140   :  { %935 = vmatprep.subr.bf16.mxu0 %v1718_v23  ;;  %1537 = vmatprep.subr.bf16.mxu1 %v1737_v39 }
 0x143   :  { %936 = vmatpush1.bf16.msra.mxu0 %v1716_v24  ;;  %1538 = vmatpush3.bf16.msra.mxu1 %v1738_v40 }
 0x144   :  { %937 = vmatprep.subr.bf16.mxu0 %v1721_v25  ;;  %1539 = vmatprep.subr.bf16.mxu1 %v1739_v41 }
 0x147   :  { %938 = vmatpush1.bf16.msra.mxu0 %v1719_v26  ;;  %1540 = vmatpush3.bf16.msra.mxu1 %v1740_v42  ;;  %v1747_v26 = vld [vmem:[#allocation5 + $0x80] sm:$0xff]  }
 0x148   :  { %939 = vmatprep.subr.bf16.mxu0 %v1724_v27  ;;  %1541 = vmatprep.subr.bf16.mxu1 %v1741_v43  ;;  %v1751_v27 = vld [vmem:[#allocation5 + $0xa0] sm:$0xff]  }
 0x14b   :  { %940 = vmatpush1.bf16.msra.mxu0 %v1722_v28  ;;  %1542 = vmatpush3.bf16.msra.mxu1 %v1742_v44  ;;  %v1752_v28 = vld [vmem:[#allocation5 + $0xa8] sm:$0xff]  }
 0x14c   :  { %941 = vmatprep.subr.bf16.mxu0 %v1727_v29  ;;  %1543 = vmatprep.subr.bf16.mxu1 %v1743_v45  ;;  %v1753_v29 = vld [vmem:[#allocation5 + $0xb0] sm:$0xff]  }
 0x14f   :  { %942 = vmatpush1.bf16.msra.mxu0 %v1725_v30  ;;  %1544 = vmatpush3.bf16.msra.mxu1 %v1744_v46  ;;  %v1754_v30 = vld [vmem:[#allocation5 + $0xb8] sm:$0xff]  }
 0x150   :  { %943 = vmatprep.subr.bf16.mxu0 %v1730_v31  ;;  %1545 = vmatprep.subr.bf16.mxu1 %v1745_v47 }
 0x153   :  { %944 = vmatpush1.bf16.msra.mxu0 %v1728_v32  ;;  %1546 = vmatpush3.bf16.msra.mxu1 %v1746_v48 }
 0x156   :  { %946 = vmatmul.mubr.bf16.vlgmr.msra.gmra.mrb[4].mxu0 %v1921_v49  ;;  %v1836_v49 = vmov 0.0  }
 0x157   :  { %1562 = vmatprep.subr.bf16.mxu1 %v1836_v49 }
 0x1e9   :  { %v1503_v50 = vpop.f32.mrb[4].mxu1 }
 0x1ea   :  { %v1504_v51 = vpop.f32.mrb[5].mxu1 }
 0x1eb   :  { %v1505_v52 = vadd.f32 %v1504_v51, %v1503_v50  ;;  %v1506_v53 = vpop.f32.mrb[6].mxu1 }
 0x1ec   :  { %v1507_v54 = vpop.f32.mrb[7].mxu1 }
 0x1ed   :  { %v1508_v55 = vadd.f32 %v1507_v54, %v1506_v53  ;;  %v991_v60 = vadd.f32 %v1505_v52, %v354_v57 }
 0x1ef   :  { %v994_v0 = vadd.f32 %v1508_v55, %v354_v57 }
 0x209   :  { %v1525_v58 = vpop.f32.mrb[8].mxu1 }
 0x20a   :  { %v1526_v59 = vpop.f32.mrb[9].mxu1 }
 0x20b   :  { %v1527_v61 = vadd.f32 %v1526_v59, %v1525_v58  ;;  %v1528_v62 = vpop.f32.mrb[10].mxu1 }
 0x20c   :  { %v1529_v63 = vpop.f32.mrb[11].mxu1 }
 0x20d   :  { %v1032_v1 = vadd.f32 %v1527_v61, %v991_v60  ;;  %v1530_v2 = vadd.f32 %v1529_v63, %v1528_v62 }
 0x20f   :  { %v1035_v4 = vadd.f32 %v1530_v2, %v994_v0  ;;  %v1040_v5 = vmax.f32 %v1032_v1, 0.0 }
 0x211   :  { %v1043_v6 = vmax.f32 %v1035_v4, 0.0 }
 0x213   :  { %v1046_v7 = vpack.c.bf16 %v1043_v6, %v1040_v5 }
 0x229   :  { %v947_v13 = vpop.f32.mrb[4].mxu0 }
 0x22a   :  { %v1582_v11 = vadd.f32 %v947_v13, %v346_v8  ;;  %v949_v14 = vpop.f32.mrb[5].mxu0 }
 0x22b   :  { %v1583_v15 = vadd.f32 %v949_v14, %v350_v9  ;;  %v951_v16 = vpop.f32.mrb[6].mxu0 }
 0x22c   :  { %v1584_v17 = vadd.f32 %v951_v16, %v346_v8  ;;  %v953_v18 = vpop.f32.mrb[7].mxu0  ;;  %v1038_v20 = vmax.f32 %v1582_v11, 0.0 }
 0x22d   :  { %v1585_v19 = vadd.f32 %v953_v18, %v350_v9  ;;  %v1039_v22 = vmax.f32 %v1583_v15, 0.0 }
 0x22e   :  { %v1041_v21 = vmax.f32 %v1584_v17, 0.0 }
 0x22f   :  { %v1042_v23 = vmax.f32 %v1585_v19, 0.0 }
 0x230   :  { %v1044_v24 = vpack.c.bf16 %v1041_v21, %v1038_v20 }
 0x231   :  { %v1045_v25 = vpack.c.bf16 %v1042_v23, %v1039_v22 }
 0x233   :  { %1277 = vmatprep.mubr.bf16.mxu1 %v1045_v25 }
 0x234   :  { %1278 = vmatmul.mubr.bf16.vlgmr.msra.gmra.mrb[12].mxu1 %v1044_v24 }
 0x235   :  { %1563 = vmatpush3.bf16.msra.mxu1 %v1747_v26  ;;  %1578 = vmatprep.mubr.msk.bf16.mxu1 %vm1837_vm3, %v1836_v49 }
 0x236   :  { %1564 = vmatprep.subr.bf16.mxu1 %v1836_v49 }
 0x239   :  { %1565 = vmatpush3.bf16.msra.mxu1 %v1748_v3 }
 0x23a   :  { %1566 = vmatprep.subr.bf16.mxu1 %v1836_v49 }
 0x23d   :  { %1567 = vmatpush3.bf16.msra.mxu1 %v1749_v10 }
 0x23e   :  { %1568 = vmatprep.subr.bf16.mxu1 %v1836_v49 }
 0x241   :  { %1569 = vmatpush3.bf16.msra.mxu1 %v1750_v12 }
 0x242   :  { %1570 = vmatprep.subr.bf16.mxu1 %v1836_v49 }
 0x245   :  { %1571 = vmatpush3.bf16.msra.mxu1 %v1751_v27 }
 0x246   :  { %1572 = vmatprep.subr.bf16.mxu1 %v1836_v49 }
 0x249   :  { %1573 = vmatpush3.bf16.msra.mxu1 %v1752_v28 }
 0x24a   :  { %1574 = vmatprep.subr.bf16.mxu1 %v1836_v49 }
 0x24d   :  { %1575 = vmatpush3.bf16.msra.mxu1 %v1753_v29 }
 0x24e   :  { %1576 = vmatprep.subr.bf16.mxu1 %v1836_v49 }
 0x251   :  { %1577 = vmatpush3.bf16.msra.mxu1 %v1754_v30 }
 0x254   :  { %1579 = vmatmul.mubr.bf16.vlgmr.msra.gmra.mrb[16].mxu1 %v1046_v7 }
 0x307   :  { %v1547_v31 = vpop.f32.mrb[12].mxu1 }
 0x308   :  { %v1548_v32 = vpop.f32.mrb[13].mxu1 }
 0x309   :  { %v1549_v33 = vadd.f32 %v1548_v32, %v1547_v31  ;;  %v1550_v34 = vpop.f32.mrb[14].mxu1 }
 0x30a   :  { %v1551_v35 = vpop.f32.mrb[15].mxu1 }
 0x30b   :  { %v1552_v36 = vadd.f32 %v1551_v35, %v1550_v34  ;;  %v1280_v38 = vadd.f32 %v1549_v33, %v1453_v37 }
 0x30d   :  { %v1283_v42 = vadd.f32 %v1552_v36, %v1453_v37 }
 0x327   :  { %v1320_v39 = vpop.f32.mrb[16].mxu1 }
 0x328   :  { %v1321_v40 = vadd.f32 %v1320_v39, %v1280_v38  ;;  %v1580_v41 = vpop.f32.mrb[17].mxu1 }
 0x329   :  { %v1323_v43 = vpop.f32.mrb[18].mxu1 }
 0x32a   :  { %v1324_v44 = vadd.f32 %v1323_v43, %v1283_v42  ;;  %v1581_v45 = vpop.f32.mrb[19].mxu1 }
 0x32c   :  { %v1485_v46 = vpack.c.bf16 %v1324_v44, %v1321_v40 }
 0x32e   :  { %1486 = vst [vmem:[#allocation7] sm:$0xff] %v1485_v46  }
 0x32f   :  { %1810 = shalt.err (!%p1807_p6)
}
 0x330   :  { %s1811_s8 = scalar_lea.hbm %s1966_s5, 128 }
 0x331   :  { %p1812_p7 = scmp.ne.s32.totalorder %s1966_s5, %s1811_s8  ;;  %p1815_p8 = scmp.lt.u32.totalorder %s1811_s8, %s1966_s5 }
 0x333   :  { %p1817_p9 = pnand %p1815_p8, %p1812_p7 }
 0x335   :  { %1820 = shalt.err (!%p1817_p9)
}
 0x336   :  { %1348 = dma.vmem_to_hbm [thread:$0]  %s1343_s30, 128, %s1966_s5, [#allocation4], %s1831_s2, %s1831_s2, %s1832_s17  }
 0x337   :  { %1825 = dma.done.wait [#allocation4], 128  }
 0x338   :  { %1826 = vsyncadd [#allocation4], 4294967168 }
 0x339   :  { %1352 = vsyncpa [#allocation3], 1 }
 0x33a   :  { %1353 = vsyncpa [#allocation6], 1 }
 0x33b   :  { %1354 = vsyncpa [#allocation4], 1 }

</bundles_post_ra>
